<compile_context>
chip_gen: v6e
topology: v6e:2x2x1
jax: 0.10.0
libtpu: 0.0.40
codegen_flags: <defaults>
</compile_context>

<pallas_src>
import jax
import jax.numpy as jnp
from jax.experimental import pallas as pl
from jax.experimental.pallas import tpu as pltpu

MAX_LOG_PERPLEXITY = 15.31824583227476

_MiB = 1024 * 1024


def _make_kernel(B, TB, H, nbj, needs_mask):
    def kernel(shift_ref, pred_ref, true_ref, w_ref, base_ref, reg_ref):
        c = pl.program_id(0)          # parallel (core) axis
        j = pl.program_id(1)          # sequential reduction axis

        # ---- init per-core accumulators (output-resident) on the first step ----
        @pl.when(j == 0)
        def _init():
            base_ref[...] = jnp.zeros_like(base_ref)
            reg_ref[...] = jnp.zeros_like(reg_ref)

        pred = pred_ref[...]                       # (TB, H) f32
        diff = pred - true_ref[...]                # padded rows are exactly zero
        sq = diff * diff

        # Row (sublane) reduce only; accumulate into a lane-wide (1, H) vreg slab.
        # Full cross-lane reduce happens once, in the JAX epilogue.
        base_ref[...] = base_ref[...] + jnp.sum(sq, axis=0, keepdims=True)

        # Linear(H, 1) regressor on the MXU; bias + clamp_max folded into one minimum:
        #   d = min(pred.w + (b - MAX), 0) == clamp_max(pred.w + b, MAX) - MAX
        pp = jnp.dot(pred, w_ref[...], preferred_element_type=jnp.float32)   # (TB, 1)
        d = jnp.minimum(pp + shift_ref[0], 0.0)

        if needs_mask:
            # Inputs are zero-padded, so only this cheap (TB, 1) term needs masking.
            row = (c * nbj + j) * TB + jax.lax.broadcasted_iota(
                jnp.int32, (TB, 1), 0)
            d = jnp.where(row < B, d, 0.0)

        reg_ref[...] = reg_ref[...] + jnp.sum(d * d, axis=0, keepdims=True)

    return kernel


def summary_loss(predicted, true, w, b, *, step=0,
                 lambda_regloss=0.5, increase_until=10000, tile_rows=None):
    """Pallas implementation of SummaryLoss.forward.

    predicted, true : (B, H) f32 embeddings
    w               : regressor weight, any of (H, 1) / (1, H) / (H,)
    b               : scalar regressor bias
    step            : module's self.i counter (static Python int; lambda warm-up)
    """
    predicted = jnp.asarray(predicted, jnp.float32)
    true = jnp.asarray(true, jnp.float32)
    B, H = predicted.shape

    # _get_lambda(): linear warm-up of lambda_regloss over `increase_until` steps.
    # TODO(synk): the module's stateful self.i counter (incremented while training) is
    # kept host-side — pass the current step in.  `step` must be a static Python int.
    eff_step = min(int(step), int(increase_until))
    lam = float(eff_step) / float(increase_until) * float(lambda_regloss)

    w_col = jnp.reshape(jnp.asarray(w, jnp.float32), (H, 1))
    shift = jnp.reshape(jnp.asarray(b, jnp.float32) - MAX_LOG_PERPLEXITY, (1,))

    # ---- generation-gated tile sizing (HBM-roofline kernel) ----
    try:
        vmem_cap = int(pltpu.get_tpu_info().vmem_capacity_bytes)
    except Exception:
        vmem_cap = 64 * _MiB                      # conservative (v7x-like) fallback
    if vmem_cap <= 64 * _MiB:                     # v7x: 64 MiB VMEM per TensorCore
        tile_target, vmem_limit = 6 * _MiB, 48 * _MiB
    else:                                         # v5e / v6e: 128 MiB VMEM
        tile_target, vmem_limit = 8 * _MiB, 64 * _MiB

    bytes_per_row = H * 4
    if tile_rows is None:
        tb = max(8, (tile_target // bytes_per_row) // 8 * 8)
    else:
        tb = max(8, (int(tile_rows) // 8) * 8)
    if tb >= B:
        tb = max(8, ((B + 7) // 8) * 8)           # single (possibly padded) tile

    nb = pl.cdiv(B, tb)
    # Split the batch reduction across two cores when there is enough work: ~2x
    # streaming bandwidth on v7x (2 TCs); just an extra grid level on v5e/v6e.
    ncores = 2 if nb >= 2 else 1
    nbj = pl.cdiv(nb, ncores)
    b_pad = ncores * nbj * tb
    needs_mask = b_pad != B
    if needs_mask:
        pad = b_pad - B
        predicted = jnp.pad(predicted, ((0, pad), (0, 0)))
        true = jnp.pad(true, ((0, pad), (0, 0)))

    # Keep 2 inputs x 2 pipeline buffers inside the limit even for user tile_rows.
    vmem_limit = max(vmem_limit, 4 * tb * bytes_per_row + 8 * _MiB)
    vmem_limit = min(vmem_limit, vmem_cap)

    kernel = _make_kernel(B, tb, H, nbj, needs_mask)

    grid_spec = pltpu.PrefetchScalarGridSpec(
        num_scalar_prefetch=0,
        grid=(ncores, nbj),
        in_specs=[
            pl.BlockSpec(memory_space=pltpu.MemorySpace.SMEM),       # shift = b - MAX
            pl.BlockSpec((tb, H), lambda c, j: (c * nbj + j, 0)),    # predicted tiles
            pl.BlockSpec((tb, H), lambda c, j: (c * nbj + j, 0)),    # true tiles
            pl.BlockSpec((H, 1), lambda c, j: (0, 0)),               # regressor weight
        ],
        out_specs=[
            pl.BlockSpec((None, 1, H), lambda c, j: (c, 0, 0)),      # base-SSE partials
            pl.BlockSpec((None, 1, 1), lambda c, j: (c, 0, 0)),      # reg-SSE partials
        ],
    )

    base_part, reg_part = pl.pallas_call(
        kernel,
        out_shape=(jax.ShapeDtypeStruct((ncores, 1, H), jnp.float32),
                   jax.ShapeDtypeStruct((ncores, 1, 1), jnp.float32)),
        grid_spec=grid_spec,
        compiler_params=pltpu.CompilerParams(
            dimension_semantics=("parallel", "arbitrary"),
            vmem_limit_bytes=int(vmem_limit),
        ),
        cost_estimate=pl.CostEstimate(
            flops=5 * B * H,
            transcendentals=0,
            bytes_accessed=int(2 * b_pad * H * 4 + H * 4 + ncores * (H + 1) * 4),
        ),
    )(shift, predicted, true, w_col)

    # Trivial epilogue: final cross-lane/core reduce + lambda-weighted combine.
    base_loss = jnp.sum(base_part) / (B * H)
    reg_loss = jnp.sum(reg_part) / B
    return lam * reg_loss + (1.0 - lam) * base_loss


if __name__ == "__main__":
    key = jax.random.PRNGKey(0)
    k1, k2, k3 = jax.random.split(key, 3)

    # Small embedding shapes; B not a multiple of the tile so padding/masking and the
    # multi-tile / two-core-slice accumulation paths are exercised (tile_rows=8).
    B, H = 20, 128
    predicted = jax.random.normal(k1, (B, H), dtype=jnp.float32)
    true = jax.random.normal(k2, (B, H), dtype=jnp.float32)

    # Deterministic frozen "regressor": Linear(H, 1).
    w = (jax.random.normal(k3, (H, 1), dtype=jnp.float32) * 0.05).astype(jnp.float32)
    b = 2.0

    step = 2500  # lambda = 2500/10000 * 0.5 = 0.125

    # Pure-JAX reference.
    lam_ref = min(step, 10000) / 10000 * 0.5
    base_ref = jnp.mean((predicted - true) ** 2)
    pp_ref = jnp.minimum(predicted @ w + b, MAX_LOG_PERPLEXITY)
    reg_ref = jnp.mean((pp_ref - MAX_LOG_PERPLEXITY) ** 2)
    ref = lam_ref * reg_ref + (1.0 - lam_ref) * base_ref

    # Small explicit tile: multi-step, two-core-slice, masked path.
    loss_small = jax.block_until_ready(
        summary_loss(predicted, true, w, b, step=step, tile_rows=8))
    assert jnp.allclose(loss_small, ref, rtol=1e-4, atol=1e-5), (loss_small, ref)

    # Default tile sizing: single padded tile path.
    loss_default = jax.block_until_ready(
        summary_loss(predicted, true, w, b, step=step))
    assert jnp.allclose(loss_default, ref, rtol=1e-4, atol=1e-5), (loss_default, ref)

    print("KERNEL_OK")
</pallas_src>

<mosaic_0001>
module attributes {stable_mosaic.version = 11 : i64} {
  func.func @kernel(%arg0: i32, %arg1: i32, %arg2: memref<1xf32, #tpu.memory_space<smem>>, %arg3: memref<8x128xf32, #tpu.memory_space<vmem>>, %arg4: memref<8x128xf32, #tpu.memory_space<vmem>>, %arg5: memref<128x1xf32, #tpu.memory_space<vmem>>, %arg6: memref<1x1x128xf32, #tpu.memory_space<vmem>>, %arg7: memref<1x1x1xf32, #tpu.memory_space<vmem>>) attributes {dimension_semantics = [#tpu.dimension_semantics<parallel>, #tpu.dimension_semantics<arbitrary>], iteration_bounds = array<i64: 2, 2>, scalar_prefetch = 0 : i64, scratch_operands = 0 : i64, tpu.core_type = #tpu.core_type<tc>, window_params = [{transform_indices = @transform_0, window_bounds = array<i64: 1>}, {transform_indices = @transform_1, window_bounds = array<i64: 8, 128>}, {transform_indices = @transform_2, window_bounds = array<i64: 8, 128>}, {pipeline_mode = #tpu.pipeline_mode<synchronous>, transform_indices = @transform_3, window_bounds = array<i64: 128, 1>}, {transform_indices = @transform_4, window_bounds = array<i64: 1, 1, 128>}, {transform_indices = @transform_5, window_bounds = array<i64: 1, 1, 1>}]} {
    %c0_i32 = arith.constant 0 : i32
    %0 = arith.cmpi eq, %arg1, %c0_i32 : i32
    %1 = arith.extui %0 : i1 to i32
    %c0_i32_0 = arith.constant 0 : i32
    %2 = arith.cmpi ne, %1, %c0_i32_0 : i32
    scf.if %2 {
      %cst_23 = arith.constant 0.000000e+00 : f32
      %41 = vector.broadcast %cst_23 : f32 to vector<1x128xf32>
      %c0_24 = arith.constant 0 : index
      %c0_25 = arith.constant 0 : index
      %c0_26 = arith.constant 0 : index
      %42 = vector.load %arg6[%c0_24, %c0_25, %c0_26] : memref<1x1x128xf32, #tpu.memory_space<vmem>>, vector<1x1x128xf32>
      %43 = vector.shape_cast %42 : vector<1x1x128xf32> to vector<1x128xf32>
      %44 = vector.shape_cast %41 : vector<1x128xf32> to vector<1x1x128xf32>
      tpu.vector_store %arg6[%c0_24, %c0_25, %c0_26], %44 {strides = array<i32>} : memref<1x1x128xf32, #tpu.memory_space<vmem>>, vector<1x1x128xf32>,
      %cst_27 = arith.constant 0.000000e+00 : f32
      %45 = vector.broadcast %cst_27 : f32 to vector<1x1xf32>
      %c0_28 = arith.constant 0 : index
      %c0_29 = arith.constant 0 : index
      %c0_30 = arith.constant 0 : index
      %46 = vector.load %arg7[%c0_28, %c0_29, %c0_30] : memref<1x1x1xf32, #tpu.memory_space<vmem>>, vector<1x1x1xf32>
      %47 = vector.shape_cast %46 : vector<1x1x1xf32> to vector<1x1xf32>
      %48 = vector.shape_cast %45 : vector<1x1xf32> to vector<1x1x1xf32>
      tpu.vector_store %arg7[%c0_28, %c0_29, %c0_30], %48 {strides = array<i32>} : memref<1x1x1xf32, #tpu.memory_space<vmem>>, vector<1x1x1xf32>,
    } else {
    }
    %c0 = arith.constant 0 : index
    %c0_1 = arith.constant 0 : index
    %3 = vector.load %arg3[%c0, %c0_1] : memref<8x128xf32, #tpu.memory_space<vmem>>, vector<8x128xf32>
    %c0_2 = arith.constant 0 : index
    %c0_3 = arith.constant 0 : index
    %4 = vector.load %arg4[%c0_2, %c0_3] : memref<8x128xf32, #tpu.memory_space<vmem>>, vector<8x128xf32>
    %5 = arith.subf %3, %4 : vector<8x128xf32>
    %6 = arith.mulf %5, %5 : vector<8x128xf32>
    %c0_4 = arith.constant 0 : index
    %c0_5 = arith.constant 0 : index
    %c0_6 = arith.constant 0 : index
    %7 = vector.load %arg6[%c0_4, %c0_5, %c0_6] : memref<1x1x128xf32, #tpu.memory_space<vmem>>, vector<1x1x128xf32>
    %8 = vector.shape_cast %7 : vector<1x1x128xf32> to vector<1x128xf32>
    %cst = arith.constant dense<0.000000e+00> : vector<128xf32>
    %9 = vector.multi_reduction <add>, %6, %cst [0] : vector<8x128xf32> to vector<128xf32>
    %10 = vector.shape_cast %9 : vector<128xf32> to vector<1x128xf32>
    %11 = arith.addf %8, %10 : vector<1x128xf32>
    %c0_7 = arith.constant 0 : index
    %c0_8 = arith.constant 0 : index
    %c0_9 = arith.constant 0 : index
    %12 = vector.load %arg6[%c0_7, %c0_8, %c0_9] : memref<1x1x128xf32, #tpu.memory_space<vmem>>, vector<1x1x128xf32>
    %13 = vector.shape_cast %12 : vector<1x1x128xf32> to vector<1x128xf32>
    %14 = vector.shape_cast %11 : vector<1x128xf32> to vector<1x1x128xf32>
    tpu.vector_store %arg6[%c0_7, %c0_8, %c0_9], %14 {strides = array<i32>} : memref<1x1x128xf32, #tpu.memory_space<vmem>>, vector<1x1x128xf32>,
    %c0_10 = arith.constant 0 : index
    %c0_11 = arith.constant 0 : index
    %15 = vector.load %arg5[%c0_10, %c0_11] : memref<128x1xf32, #tpu.memory_space<vmem>>, vector<128x1xf32>
    %cst_12 = arith.constant dense<0.000000e+00> : vector<8x1xf32>
    %16 = tpu.matmul %3, %15, %cst_12 {dimension_numbers = #tpu.dot_dimension_numbers<[1], [0], [0], [1], [0, 0, 1, 1], [], []>} : vector<8x128xf32>, vector<128x1xf32>, vector<8x1xf32> -> vector<8x1xf32>
    %c0_13 = arith.constant 0 : index
    %17 = memref.load %arg2[%c0_13] : memref<1xf32, #tpu.memory_space<smem>>
    %18 = vector.broadcast %17 : f32 to vector<8x1xf32>
    %19 = arith.addf %16, %18 : vector<8x1xf32>
    %cst_14 = arith.constant 0.000000e+00 : f32
    %20 = vector.broadcast %cst_14 : f32 to vector<8x1xf32>
    %21 = arith.minimumf %19, %20 : vector<8x1xf32>
    %c2_i32 = arith.constant 2 : i32
    %22 = arith.muli %arg0, %c2_i32 : i32
    %23 = arith.addi %22, %arg1 : i32
    %c8_i32 = arith.constant 8 : i32
    %24 = arith.muli %23, %c8_i32 : i32
    %25 = tpu.iota {dimensions = array<i32: 0>} : vector<8x1xi32>
    %26 = vector.broadcast %24 : i32 to vector<8x1xi32>
    %27 = arith.addi %26, %25 : vector<8x1xi32>
    %c20_i32 = arith.constant 20 : i32
    %28 = vector.broadcast %c20_i32 : i32 to vector<8x1xi32>
    %29 = arith.cmpi slt, %27, %28 : vector<8x1xi32>
    %cst_15 = arith.constant 0.000000e+00 : f32
    %30 = vector.broadcast %cst_15 : f32 to vector<8x1xf32>
    %31 = arith.select %29, %21, %30 : vector<8x1xi1>, vector<8x1xf32>
    %c0_16 = arith.constant 0 : index
    %c0_17 = arith.constant 0 : index
    %c0_18 = arith.constant 0 : index
    %32 = vector.load %arg7[%c0_16, %c0_17, %c0_18] : memref<1x1x1xf32, #tpu.memory_space<vmem>>, vector<1x1x1xf32>
    %33 = vector.shape_cast %32 : vector<1x1x1xf32> to vector<1x1xf32>
    %34 = arith.mulf %31, %31 : vector<8x1xf32>
    %cst_19 = arith.constant dense<0.000000e+00> : vector<1xf32>
    %35 = vector.multi_reduction <add>, %34, %cst_19 [0] : vector<8x1xf32> to vector<1xf32>
    %36 = vector.shape_cast %35 : vector<1xf32> to vector<1x1xf32>
    %37 = arith.addf %33, %36 : vector<1x1xf32>
    %c0_20 = arith.constant 0 : index
    %c0_21 = arith.constant 0 : index
    %c0_22 = arith.constant 0 : index
    %38 = vector.load %arg7[%c0_20, %c0_21, %c0_22] : memref<1x1x1xf32, #tpu.memory_space<vmem>>, vector<1x1x1xf32>
    %39 = vector.shape_cast %38 : vector<1x1x1xf32> to vector<1x1xf32>
    %40 = vector.shape_cast %37 : vector<1x1xf32> to vector<1x1x1xf32>
    tpu.vector_store %arg7[%c0_20, %c0_21, %c0_22], %40 {strides = array<i32>} : memref<1x1x1xf32, #tpu.memory_space<vmem>>, vector<1x1x1xf32>,
    return
  }
  func.func @transform_0(%arg0: i32, %arg1: i32) -> i32 {
    %c0_i32 = arith.constant 0 : i32
    %c0_i32_0 = arith.constant 0 : i32
    return %c0_i32 : i32
  }
  func.func @transform_1(%arg0: i32, %arg1: i32) -> (i32, i32) {
    %c2_i32 = arith.constant 2 : i32
    %0 = arith.muli %arg0, %c2_i32 : i32
    %1 = arith.addi %0, %arg1 : i32
    %c0_i32 = arith.constant 0 : i32
    %c0_i32_0 = arith.constant 0 : i32
    return %1, %c0_i32 : i32, i32
  }
  func.func @transform_2(%arg0: i32, %arg1: i32) -> (i32, i32) {
    %c2_i32 = arith.constant 2 : i32
    %0 = arith.muli %arg0, %c2_i32 : i32
    %1 = arith.addi %0, %arg1 : i32
    %c0_i32 = arith.constant 0 : i32
    %c0_i32_0 = arith.constant 0 : i32
    return %1, %c0_i32 : i32, i32
  }
  func.func @transform_3(%arg0: i32, %arg1: i32) -> (i32, i32) {
    %c0_i32 = arith.constant 0 : i32
    %c0_i32_0 = arith.constant 0 : i32
    %c0_i32_1 = arith.constant 0 : i32
    return %c0_i32, %c0_i32_0 : i32, i32
  }
  func.func @transform_4(%arg0: i32, %arg1: i32) -> (i32, i32, i32) {
    %c0_i32 = arith.constant 0 : i32
    %c0_i32_0 = arith.constant 0 : i32
    %c0_i32_1 = arith.constant 0 : i32
    return %arg0, %c0_i32, %c0_i32_0 : i32, i32, i32
  }
  func.func @transform_5(%arg0: i32, %arg1: i32) -> (i32, i32, i32) {
    %c0_i32 = arith.constant 0 : i32
    %c0_i32_0 = arith.constant 0 : i32
    %c0_i32_1 = arith.constant 0 : i32
    return %arg0, %c0_i32, %c0_i32_0 : i32, i32, i32
  }
}

</mosaic_0001>

<bundles_post_ra>
// kernel: tpu_custom_call.1
= control target key start
LH: loop header
LB: loop body
LE: loop exit
PB: predicated region body
PF: predicated region fallthrough
CT: control target
= control target key end

     0   :  { %s1011_s0 = inlined_call_operand.<no memory space> [shape: f32[1], index: 0, kind: input, shape index: {}]   ;;  %s1012_s1 = inlined_call_operand.vmem [shape: f32[32,128], index: 1, kind: input, shape index: {}]   ;;  %s1013_s2 = inlined_call_operand.vmem [shape: f32[32,128], index: 2, kind: input, shape index: {}]   ;;  %s1014_s3 = inlined_call_operand.vmem [shape: f32[128,1], index: 3, kind: input, shape index: {}]   ;;  %s1015_s4 = inlined_call_operand.hbm [shape: f32[2,1,128], index: 4, kind: output, shape index: {0}]   ;;  %s1016_s5 = inlined_call_operand.vmem [shape: f32[2,1,1], index: 5, kind: output, shape index: {1}]  }
   0x1   :  { %11 = sst [smem:[#allocation2]] %s1011_s0 }
   0x2   :  { %12 = vsyncpa [#allocation4], 0 }
   0x3   :  { %14 = vsyncpa [#allocation4 + $0x1], 0  ;;  %s809_s20 = smov 0   ;;  %s811_s21 = smov 0  }
   0x4   :  { %s813_s22 = smov 0   ;;  %s815_s23 = smov 0  }
   0x5   :  { %s817_s24 = smov 0   ;;  %s819_s25 = smov 0  }
   0x6   :  { %s821_s26 = smov 0   ;;  %s823_s27 = smov 0  }
   0x7 LB: > { %s533_s0 = sadd.s32 4294967295, %s770_s27   ;;  %s534_s28 = sadd.s32 4294967294, %s770_s27   ;;  %s770_s27 = sphi %s823_s27, %s20_s27   ;;  %s766_s26 = sphi %s821_s26, %s1032_s26   ;;  %s762_s25 = sphi %s819_s25, %s1031_s25   ;;  %s758_s24 = sphi %s817_s24, %s1030_s24   ;;  %s754_s23 = sphi %s815_s23, %s1029_s23   ;;  %s750_s22 = sphi %s813_s22, %s1028_s22   ;;  %s746_s21 = sphi %s811_s21, %s1027_s21   ;;  %s742_s20 = sphi %s809_s20, %s1026_s20  }
   0x8   : > { %s29_s29 = sadd.s32 1, %s762_s25  ;;  %s32_s30 = sadd.s32 1, %s766_s26 }
   0x9   : > { %p30_p0 = scmp.ge.s32.totalorder %s29_s29, 2  ;;  %p151_p1 = scmp.ne.s32.totalorder %s750_s22, %s746_s21 }
   0xa   : > { %p152_p2 = scmp.eq.s32.totalorder %s533_s0, 3  ;;  %p157_p4 = scmp.ne.s32.totalorder %s746_s21, %s742_s20 }
   0xb   : > { %s1034_s29 = smov (%p30_p0, %s29_s29), 0  ;;  %s1036_s30 = smov (!%p30_p0, %s32_s30), %s766_s26 }
   0xc   : > { %1018 = sst [smem:[#allocation6_spill]] %s1034_s29  ;;  %p858_p3 = por %p152_p2, %p151_p1 }
   0xd   : > { %p34_p5 = scmp.ge.s32.totalorder %s1036_s30, 2  ;;  %p158_p6 = scmp.eq.s32.totalorder %s534_s28, 3 }
   0xe   : > { %p541_p7 = scmp.ge.s32.totalorder %s770_s27, 1  ;;  %p230_p8 = scmp.lt.s32.totalorder %s770_s27, 5 }
   0xf   : > { %s1038_s30 = smov (%p34_p5, %s1036_s30), 0  ;;  %p868_p9 = por %p158_p6, %p157_p4 }
  0x10   : > { %1020 = sst [smem:[#allocation7_spill]] %s1038_s30  ;;  %p231_p10 = pnand %p541_p7, %p230_p8 }
  0x11   : > { %s138_s8 = ssub.s32 %s766_s26, %s1038_s30  ;;  %s141_s9 = sadd.s32 1, %s750_s22 }
  0x12   : > { %p139_p11 = scmp.eq.s32.totalorder %s138_s8, 0  ;;  %234 = sbr.rel (%p231_p10) target bundleno = 284 (0x11c), region = 36 }
  0x13   : > { %s542_s12 = sshll.u32 (!%p231_p10), %s758_s24, 1  ;;  %p283_p13 = scmp.lt.s32.totalorder (!%p231_p10), %s758_s24, 1 }
  0x14   : > { %s876_s10 = scalar_select %p139_p11, %s750_s22, %s141_s9  }
  0x15   : > { %s881_s13 = sadd.s32 (!%p231_p10), %s754_s23, %s542_s12  ;;  %s1022_s30 = sand.u32 (!%p231_p10), 1, %s746_s21  }
  0x16   : > { %p269_p12 = scmp.lt.s32.totalorder (!%p231_p10), %s881_s13, 3  ;;  %s904_s29 = scalar_lea.vmem (!%p231_p10), [#allocation3], %s1022_s30 }
  0x17   : > { %s284_s15 = scalar_select %p283_p13, %s758_s24, 1 }
  0x18   : > { %s270_s14 = scalar_select %p269_p12, %s881_s13, 3 }
  0x19   : > { %s900_s11 = scalar_lea.vmem %s1016_s5, %s284_s15  ;;  %p546_p0 = scmp.ne.s32.totalorder %s754_s23, 0 }
  0x1a   : > { %s543_s16 = sshll.u32 %s270_s14, 3 }
  0x1b   : > { %s890_s19 = scalar_lea.vmem %s1012_s1, %s543_s16  ;;  %s895_s8 = scalar_lea.vmem %s1013_s2, %s543_s16 }
  0x1c   : > { %289 = sbr.rel (%p546_p0) target bundleno = 35 (0x23), region = 40 }
  0x21   : > { %vm291_vm0 = vcmask 0   ;;  %v772_v0 = vmov 0.0  }
  0x22   : > { %290 = vst [vmem:[%s904_s29] sm:$0x1] %v772_v0  ;;  %292 = vst.msk [vmem:[%s900_s11] sm:$0x1] %vm291_vm0, %v772_v0 }
  0x23 PF: > { %v321_v1 = vld [vmem:[%s1014_s3 + $0x78] sm:$0xff]  ;;  %v773_v2 = vmov 0.0   ;;  %v320_v3 = vld [vmem:[%s1014_s3 + $0x70] sm:$0xff]  ;;  %vm774_vm1 = vmmov 0   ;;  %v319_v4 = vld [vmem:[%s1014_s3 + $0x68] sm:$0xff]  ;;  %s549_s12 = sshll.u32 %s758_s24, 4 }
  0x24   : > { %569 = vmatprep.subr.mxu0 %v773_v2  ;;  %601 = vmatprep.mubr.msk.f32.mxu0 %vm774_vm1, %v773_v2  ;;  %v318_v5 = vld [vmem:[%s1014_s3 + $0x60] sm:$0xff]  ;;  %v317_v6 = vld [vmem:[%s1014_s3 + $0x58] sm:$0xff]  ;;  %v316_v7 = vld [vmem:[%s1014_s3 + $0x50] sm:$0xff]  ;;  %s431_s15 = scalar_lea.hbm %s1015_s4, %s549_s12  ;;  %s775_s30 = smov [#allocation3]  }
  0x25   : > { %570 = vmatpush3.msra.mxu0 %v321_v1  ;;  %v315_v8 = vld [vmem:[%s1014_s3 + $0x48] sm:$0xff]  ;;  %v314_v9 = vld [vmem:[%s1014_s3 + $0x40] sm:$0xff]  ;;  %v313_v10 = vld [vmem:[%s1014_s3 + $0x38] sm:$0xff]  ;;  %s682_s18 = sshll.u32 %s775_s30, 4  ;;  %s683_s18 = int_to_ptr.vmem [resolvable:$false] %s682_s18 }
  0x26   : > { %571 = vmatprep.subr.mxu0 %v773_v2  ;;  %v312_v11 = vld [vmem:[%s1014_s3 + $0x30] sm:$0xff]  ;;  %v311_v12 = vld [vmem:[%s1014_s3 + $0x28] sm:$0xff]  ;;  %v310_v13 = vld [vmem:[%s1014_s3 + $0x20] sm:$0xff]  ;;  %s684_s0 = scalar_lea.vmem %s683_s18, 32 }
  0x27   : > { %572 = vmatpush3.msra.mxu0 %v320_v3  ;;  %v309_v14 = vld [vmem:[%s1014_s3 + $0x18] sm:$0xff]  ;;  %v308_v15 = vld [vmem:[%s1014_s3 + $0x10] sm:$0xff]  ;;  %v307_v16 = vld [vmem:[%s1014_s3 + $0x8] sm:$0xff] }
  0x28   : > { %573 = vmatprep.subr.mxu0 %v773_v2  ;;  %v306_v17 = vld [vmem:[%s1014_s3] sm:$0xff] }
  0x29   : > { %574 = vmatpush3.msra.mxu0 %v319_v4  ;;  %v293_v18 = vld [vmem:[%s890_s19] sm:$0xff]  ;;  %s433_s19 = sshll.u32 %s904_s29, 4  ;;  %s434_s19 = int_to_ptr.vmem [resolvable:$true] %s433_s19 }
  0x2a   : > { %575 = vmatprep.subr.mxu0 %v773_v2  ;;  %v294_v19 = vld [vmem:[%s895_s8] sm:$0xff]  ;;  %s1023_s8 = sand.u32 1, %s746_s21   ;;  %s678_s23 = scalar_lea.vmem %s434_s19, 16 }
  0x2b   : > { %576 = vmatpush3.msra.mxu0 %v318_v5  ;;  %v295_v20 = vsub.f32 %v293_v18, %v294_v19  ;;  %v297_v28 = vld [vmem:[%s904_s29] sm:$0x1]  ;;  %s418_s17 = scalar_lea.sflag [#allocation4], %s1023_s8  ;;  %p679_p1 = scmp.ne.s32.totalorder %s434_s19, %s678_s23 }
  0x2c   : > { %577 = vmatprep.subr.mxu0 %v773_v2  ;;  %p685_p5 = scmp.lt.s32.totalorder %s434_s19, %s683_s18  ;;  %p686_p6 = scmp.lt.s32.totalorder %s684_s0, %s678_s23 }
  0x2d   : > { %578 = vmatpush3.msra.mxu0 %v317_v6  ;;  %v296_v21 = vmul.f32 %v295_v20, %v295_v20  ;;  %p680_p2 = pnand %p679_p1, %p858_p3 }
  0x2e   : > { %579 = vmatprep.subr.mxu0 %v773_v2  ;;  %p687_p7 = por %p686_p6, %p685_p5 }
  0x2f   : > { %580 = vmatpush3.msra.mxu0 %v316_v7  ;;  %v298_v22 = vrot.slane %v296_v21, 4  ;;  %p681_p4 = pneg %p680_p2 }
  0x30   : > { %581 = vmatprep.subr.mxu0 %v773_v2 }
  0x31   : > { %582 = vmatpush3.msra.mxu0 %v315_v8  ;;  %v299_v23 = vadd.f32 %v298_v22, %v296_v21  ;;  %p688_p8 = pnand %p687_p7, %p681_p4 }
  0x32   : > { %583 = vmatprep.subr.mxu0 %v773_v2 }
  0x33   : > { %584 = vmatpush3.msra.mxu0 %v314_v9  ;;  %v300_v24 = vrot.slane %v299_v23, 2 }
  0x34   : > { %585 = vmatprep.subr.mxu0 %v773_v2 }
  0x35   : > { %586 = vmatpush3.msra.mxu0 %v313_v10  ;;  %v301_v25 = vadd.f32 %v300_v24, %v299_v23 }
  0x36   : > { %587 = vmatprep.subr.mxu0 %v773_v2 }
  0x37   : > { %588 = vmatpush3.msra.mxu0 %v312_v11  ;;  %v302_v26 = vrot.slane %v301_v25, 1 }
  0x38   : > { %589 = vmatprep.subr.mxu0 %v773_v2 }
  0x39   : > { %590 = vmatpush3.msra.mxu0 %v311_v12  ;;  %v303_v27 = vadd.f32 %v302_v26, %v301_v25 }
  0x3a   : > { %591 = vmatprep.subr.mxu0 %v773_v2 }
  0x3b   : > { %592 = vmatpush3.msra.mxu0 %v310_v13  ;;  %v304_v29 = vadd.f32 %v303_v27, %v297_v28 }
  0x3c   : > { %593 = vmatprep.subr.mxu0 %v773_v2 }
  0x3d   : > { %594 = vmatpush3.msra.mxu0 %v309_v14  ;;  %305 = vst [vmem:[%s904_s29] sm:$0x1] %v304_v29 }
  0x3e   : > { %595 = vmatprep.subr.mxu0 %v773_v2 }
  0x3f   : > { %596 = vmatpush3.msra.mxu0 %v308_v15 }
  0x40   : > { %597 = vmatprep.subr.mxu0 %v773_v2 }
  0x41   : > { %598 = vmatpush3.msra.mxu0 %v307_v16 }
  0x42   : > { %599 = vmatprep.subr.mxu0 %v773_v2 }
  0x43   : > { %600 = vmatpush3.msra.mxu0 %v306_v17 }
  0x44   : > { %602 = vmatmul.mubr.f32.vlgmr.msra.gmra.mxu0 %v293_v18 }
  0x45   : > { %691 = shalt.err (!%p688_p8)
}
  0x46   : > { %s692_s24 = scalar_lea.hbm %s431_s15, 16  ;;  %s696_s9 = scalar_lea.hbm %s1015_s4, 32 }
  0x47   : > { %p693_p10 = scmp.ne.s32.totalorder %s431_s15, %s692_s24  ;;  %p697_p13 = scmp.lt.s32.totalorder %s431_s15, %s1015_s4 }
  0x48   : > { %p698_p0 = scmp.lt.s32.totalorder %s696_s9, %s692_s24 }
  0x49   : > { %p694_p11 = pnand %p693_p10, %p858_p3 }
  0x4a   : > { %p699_p1 = por %p698_p0, %p697_p13 }
  0x4b   : > { %p695_p12 = pneg %p694_p11 }
  0x4d   : > { %p700_p2 = pnand %p699_p1, %p695_p12 }
  0x4f   : > { %703 = shalt.err (!%p700_p2)
}
  0x50   : > { %604 = dma.vmem_to_hbm [thread:$0]  (%p858_p3), %s434_s19, 16, %s431_s15, %s418_s17   ;;  %v398_v30 = vlaneseq  ;;  %vm406_vm3 = vcmask 7168   ;;  %v404_v47 = vld [vmem:[%s900_s11] sm:$0x1]  ;;  %vm415_vm4 = vcmask 0  }
  0x51   : > { %s322_s16 = sld [smem:[#allocation2]]  ;;  %s548_s8 = sshll.u32 %s881_s13, 3 }
  0x52   : > { %v399_v31 = vshrl.u32 %v398_v30, 7  ;;  %v400_v32 = vstv %s548_s8 }
  0x54   : > { %v401_v34 = vadd.s32 %v400_v32, %v399_v31 }
  0x56   : > { %vm402_vm2 = vcmp.lt.s32.totalorder %v401_v34, 20 }
  0x57   : > { %v323_v33 = vstv %s322_s16 }
 0x104   : > { %v390_v35 = vpop.f32.mrf.mxu0 }
 0x105   : > { %v391_v36 = vadd.f32 %v390_v35, %v323_v33 }
 0x106   : > { %v603_v37 = vpop.f32.mrf.mxu0 }
 0x107   : > { %v394_v38 = vmin.f32 %v391_v36, 0.0 }
 0x109   : > { %v403_v39 = vsel %vm402_vm2, %v394_v38, 0.0 }
 0x10a   : > { %v405_v40 = vmul.f32 %v403_v39, %v403_v39 }
 0x10c   : > { %v407_v41 = vsel %vm406_vm3, %v405_v40, 0.0 }
 0x10d   : > { %v408_v42 = vrot.slane %v407_v41, 4 }
 0x10f   : > { %v409_v43 = vadd.f32 %v408_v42, %v407_v41 }
 0x111   : > { %v410_v44 = vrot.slane %v409_v43, 2 }
 0x113   : > { %v411_v45 = vadd.f32 %v410_v44, %v409_v43 }
 0x115   : > { %v412_v46 = vrot.slane %v411_v45, 1 }
 0x117   : > { %v413_v48 = vadd.f32 %v412_v46, %v411_v45 }
 0x119   : > { %v414_v49 = vadd.f32 %v413_v48, %v404_v47 }
 0x11b   : > { %416 = vst.msk [vmem:[%s900_s11] sm:$0x1] %vm415_vm4, %v414_v49 }
 0x11c PF: > { %p610_p3 = scmp.ge.s32.totalorder %s770_s27, 2  ;;  %s448_s6 = sand.u32 1, %s742_s20  }
 0x11d   : > { %s449_s13 = scalar_lea.sflag [#allocation4], %s448_s6 }
 0x11e   : > { %p607_p4 = pnand %p610_p3, %p868_p9 }
 0x120   : > { %p608_p5 = pneg %p607_p4 }
 0x122   : > { %737 = dma.done.wait (%p608_p5), %s449_s13, 16  }
 0x123   : > { %739 = vsyncadd (%p608_p5), %s449_s13, 4294967280  ;;  %s20_s27 = sadd.s32 1, %s770_s27   ;;  %s1024_s11 = sld [smem:[#allocation6_spill]] }
 0x124   : > { %p17_p6 = scmp.ge.s32.totalorder %s20_s27, 6   ;;  %s1025_s19 = sld [smem:[#allocation7_spill]] }
 0x125   : > { %s1026_s20 = smov %s746_s21  ;;  %s1027_s21 = smov %s750_s22 }
 0x126   : > { %s1028_s22 = smov %s876_s10  ;;  %s1029_s23 = smov %s762_s25 }
 0x127   : > { %s1030_s24 = smov %s766_s26  ;;  %19 = sbr.rel (!%p17_p6) target bundleno = 7 (0x7), region = 90 }
 0x129   : > { %s1031_s25 = smov %s1024_s11 }
 0x12a   : > { %s1032_s26 = smov %s1025_s19 }
 0x12c   :  { %459 = vsyncpa [#allocation4], 1 }
 0x12d   :  { %461 = vsyncpa [#allocation4 + $0x1], 1 }

</bundles_post_ra>
